<compile_context>
chip_gen: v5e
topology: v5e:2x2
jax: 0.10.0
libtpu: 0.0.40
codegen_flags: <defaults>
</compile_context>

<pallas_src>
import functools

import jax
import jax.numpy as jnp
from jax.experimental import pallas as pl
from jax.experimental.pallas import tpu as pltpu

LANES = 128
SUBLANES = 8
MIN_TOTAL = SUBLANES * LANES          # 1024 = one (8,128) f32 vreg slab
MAX_BLOCK_LANES = 32768               # (8, 32768) f32 block = 1 MiB


def _bucket_total(n: int) -> int:
    """Padded element count: power of two, >= 1024 (bounds Mosaic recompiles)."""
    return max(MIN_TOTAL, int(pl.next_power_of_2(max(n, 1))))


def _f_score(p, r):
    """SPICE F-score, elementwise; exactly 0 where p + r == 0 (incl. padding)."""
    denom = p + r
    pos = denom > 0.0
    inv = pl.reciprocal(jnp.where(pos, denom, 1.0), approx=False)
    return jnp.where(pos, (2.0 * p) * r * inv, 0.0)


def _scores_kernel(p_ref, r_ref, scores_ref):
    scores_ref[...] = _f_score(p_ref[...], r_ref[...])


def _sum_kernel(p_ref, r_ref, sum_ref):
    @pl.when(pl.program_id(0) == 0)
    def _():
        sum_ref[...] = jnp.zeros_like(sum_ref)

    # Padded lanes contribute exactly 0, so the full-block sum is exact.
    sum_ref[...] = sum_ref[...] + jnp.sum(_f_score(p_ref[...], r_ref[...]))


@functools.partial(jax.jit, static_argnames=("block_lanes",), donate_argnums=(0,))
def _spice_scores_jit(p_pad, r_pad, n_items, *, block_lanes):
    total = p_pad.shape[0]
    lane_total = total // SUBLANES
    grid_n = lane_total // block_lanes
    p2 = p_pad.reshape(SUBLANES, lane_total)
    r2 = r_pad.reshape(SUBLANES, lane_total)
    blk = pl.BlockSpec((SUBLANES, block_lanes), lambda i: (0, i))

    scores2 = pl.pallas_call(
        _scores_kernel,
        out_shape=jax.ShapeDtypeStruct((SUBLANES, lane_total), jnp.float32),
        grid=(grid_n,),
        in_specs=[blk, blk],
        out_specs=blk,
        input_output_aliases={0: 0},      # scores reuse the (donated) p buffer
        compiler_params=pltpu.CompilerParams(
            dimension_semantics=("parallel",)),   # v7x: both TensorCores
    )(p2, r2)

    # Padded entries are exactly zero, so a full-slab sum is exact.
    n_safe = jnp.maximum(n_items, 1).astype(jnp.float32)
    score = jnp.sum(scores2) / n_safe
    return scores2.reshape(total), score


@functools.partial(jax.jit, static_argnames=("block_lanes",))
def _spice_sum_jit(p_pad, r_pad, n_items, *, block_lanes):
    total = p_pad.shape[0]
    lane_total = total // SUBLANES
    grid_n = lane_total // block_lanes
    p2 = p_pad.reshape(SUBLANES, lane_total)
    r2 = r_pad.reshape(SUBLANES, lane_total)
    blk = pl.BlockSpec((SUBLANES, block_lanes), lambda i: (0, i))

    sums = pl.pallas_call(
        _sum_kernel,
        out_shape=jax.ShapeDtypeStruct((1, LANES), jnp.float32),
        grid=(grid_n,),
        in_specs=[blk, blk],
        out_specs=pl.BlockSpec((1, LANES), lambda i: (0, 0)),  # resident accumulator
        compiler_params=pltpu.CompilerParams(
            dimension_semantics=("arbitrary",)),
    )(p2, r2)

    n_safe = jnp.maximum(n_items, 1).astype(jnp.float32)
    return sums[0, 0] / n_safe


def spice_forward(precision, recall, return_dict: bool = False,
                  *, max_block_lanes: int = MAX_BLOCK_LANES):
    """JAX/Pallas analogue of Spice.forward's numeric path.

    precision, recall: (N,) per-caption SPICE tuple precision / recall.
    Returns the mean F-score (and per-item scores when return_dict=True).
    Deviation: an empty batch returns 0.0 where the torch original would NaN.
    """
    if precision.shape != recall.shape:
        raise ValueError(
            f"Number of hypothesis and references are different "
            f"({precision.shape} != {recall.shape}).")
    assert max_block_lanes % LANES == 0
    assert max_block_lanes & (max_block_lanes - 1) == 0

    n = int(precision.shape[0])
    total = _bucket_total(n)
    block_lanes = min(total // SUBLANES, max_block_lanes)

    # Zero-pad (outside the jit, to the bucketed size) into FRESH buffers: the
    # zero tail is the single guarantee that padded lanes score 0, and fresh
    # buffers make the donation in _spice_scores_jit safe for the caller.
    p_pad = jnp.zeros((total,), jnp.float32).at[:n].set(
        jnp.asarray(precision, jnp.float32))
    r_pad = jnp.zeros((total,), jnp.float32).at[:n].set(
        jnp.asarray(recall, jnp.float32))
    n_arr = jnp.int32(n)

    if not return_dict:
        return _spice_sum_jit(p_pad, r_pad, n_arr, block_lanes=block_lanes)

    scores_pad, score = _spice_scores_jit(p_pad, r_pad, n_arr,
                                          block_lanes=block_lanes)
    return {"score": score, "scores": scores_pad[:n]}


if __name__ == "__main__":
    # TODO(synk): the Java scene-graph parsing / subprocess / JSON plumbing of
    # the original module has no tensor equivalent; only the numeric per-item
    # F-score + mean reduction is implemented here.

    def reference(p, r):
        denom = p + r
        safe = jnp.where(denom > 0, denom, 1.0)
        return jnp.where(denom > 0, 2.0 * p * r / safe, 0.0)

    key = jax.random.PRNGKey(0)
    kp, kr, kp2, kr2 = jax.random.split(key, 4)

    # Case 1: small batch (single-block grid), includes a p + r == 0 pair.
    N = 8
    precision = jax.random.uniform(kp, (N,), dtype=jnp.float32).at[0].set(0.0)
    recall = jax.random.uniform(kr, (N,), dtype=jnp.float32).at[0].set(0.0)
    f_ref = reference(precision, recall)

    out = spice_forward(precision, recall, return_dict=True)
    jax.block_until_ready(out)
    assert out["scores"].shape == (N,)
    assert jnp.allclose(out["scores"], f_ref, atol=1e-6)
    assert jnp.allclose(out["score"], f_ref.mean(), atol=1e-5)

    score_only = spice_forward(precision, recall, return_dict=False)
    jax.block_until_ready(score_only)
    assert jnp.allclose(score_only, f_ref.mean(), atol=1e-5)

    # Case 2: still small shapes, but a multi-block grid (block_lanes forced to
    # 128) to exercise the pipelined scores path and the cross-block sum
    # accumulator.
    N2 = 2000
    prec2 = jax.random.uniform(kp2, (N2,), dtype=jnp.float32)
    rec2 = jax.random.uniform(kr2, (N2,), dtype=jnp.float32)
    f_ref2 = reference(prec2, rec2)

    out2 = spice_forward(prec2, rec2, return_dict=True, max_block_lanes=128)
    jax.block_until_ready(out2)
    assert out2["scores"].shape == (N2,)
    assert jnp.allclose(out2["scores"], f_ref2, atol=1e-6)
    assert jnp.allclose(out2["score"], f_ref2.mean(), atol=1e-5)

    score2 = spice_forward(prec2, rec2, return_dict=False, max_block_lanes=128)
    jax.block_until_ready(score2)
    assert jnp.allclose(score2, f_ref2.mean(), atol=1e-5)

    print("KERNEL_OK")
</pallas_src>

<mosaic_0001>
module attributes {stable_mosaic.version = 11 : i64} {
  func.func @_scores_kernel(%arg0: i32, %arg1: memref<8x128xf32, #tpu.memory_space<vmem>>, %arg2: memref<8x128xf32, #tpu.memory_space<vmem>>, %arg3: memref<8x128xf32, #tpu.memory_space<vmem>>) attributes {dimension_semantics = [#tpu.dimension_semantics<parallel>], iteration_bounds = array<i64: 1>, scalar_prefetch = 0 : i64, scratch_operands = 0 : i64, tpu.core_type = #tpu.core_type<tc>, window_params = [{transform_indices = @transform_0, window_bounds = array<i64: 8, 128>}, {transform_indices = @transform_1, window_bounds = array<i64: 8, 128>}, {transform_indices = @transform_2, window_bounds = array<i64: 8, 128>}]} {
    %c0 = arith.constant 0 : index
    %c0_0 = arith.constant 0 : index
    %0 = vector.load %arg1[%c0, %c0_0] : memref<8x128xf32, #tpu.memory_space<vmem>>, vector<8x128xf32>
    %c0_1 = arith.constant 0 : index
    %c0_2 = arith.constant 0 : index
    %1 = vector.load %arg2[%c0_1, %c0_2] : memref<8x128xf32, #tpu.memory_space<vmem>>, vector<8x128xf32>
    %2 = arith.addf %0, %1 : vector<8x128xf32>
    %cst = arith.constant 0.000000e+00 : f32
    %3 = vector.broadcast %cst : f32 to vector<8x128xf32>
    %4 = arith.cmpf ogt, %2, %3 : vector<8x128xf32>
    %cst_3 = arith.constant 1.000000e+00 : f32
    %5 = vector.broadcast %cst_3 : f32 to vector<8x128xf32>
    %6 = arith.select %4, %2, %5 : vector<8x128xi1>, vector<8x128xf32>
    %7 = tpu.reciprocal %6 : vector<8x128xf32> -> vector<8x128xf32>
    %cst_4 = arith.constant 2.000000e+00 : f32
    %8 = vector.broadcast %cst_4 : f32 to vector<8x128xf32>
    %9 = arith.mulf %8, %0 : vector<8x128xf32>
    %10 = arith.mulf %9, %1 : vector<8x128xf32>
    %11 = arith.mulf %10, %7 : vector<8x128xf32>
    %cst_5 = arith.constant 0.000000e+00 : f32
    %12 = vector.broadcast %cst_5 : f32 to vector<8x128xf32>
    %13 = arith.select %4, %11, %12 : vector<8x128xi1>, vector<8x128xf32>
    %c0_6 = arith.constant 0 : index
    %c0_7 = arith.constant 0 : index
    %14 = vector.load %arg3[%c0_6, %c0_7] : memref<8x128xf32, #tpu.memory_space<vmem>>, vector<8x128xf32>
    tpu.vector_store %arg3[%c0_6, %c0_7], %13 {strides = array<i32>} : memref<8x128xf32, #tpu.memory_space<vmem>>, vector<8x128xf32>,
    return
  }
  func.func @transform_0(%arg0: i32) -> (i32, i32) {
    %c0_i32 = arith.constant 0 : i32
    %c0_i32_0 = arith.constant 0 : i32
    return %c0_i32, %arg0 : i32, i32
  }
  func.func @transform_1(%arg0: i32) -> (i32, i32) {
    %c0_i32 = arith.constant 0 : i32
    %c0_i32_0 = arith.constant 0 : i32
    return %c0_i32, %arg0 : i32, i32
  }
  func.func @transform_2(%arg0: i32) -> (i32, i32) {
    %c0_i32 = arith.constant 0 : i32
    %c0_i32_0 = arith.constant 0 : i32
    return %c0_i32, %arg0 : i32, i32
  }
}

</mosaic_0001>

<bundles_post_ra>
// kernel: _spice_scores_jit.1
= control target key start
LH: loop header
LB: loop body
LE: loop exit
PB: predicated region body
PF: predicated region fallthrough
CT: control target
= control target key end

     0   :  { %7 = vsyncpa [#allocation3], 0  ;;  %s194_s0 = inlined_call_operand.hbm [shape: f32[8,128], index: 0, kind: input, shape index: {}, may-alias: {0,2}]   ;;  %s195_s1 = inlined_call_operand.hbm [shape: f32[8,128], index: 1, kind: input, shape index: {}]   ;;  %s196_s2 = inlined_call_operand.hbm [shape: f32[8,128], index: 2, kind: output, shape index: {}, may-alias: {0,2}]  }
   0x1   :  { %8 = vsyncpa [#allocation6], 0 }
   0x2   :  { %9 = vsyncpa [#allocation4], 0  ;;  %s15_s11 = sshll.u32 %s194_s0, 4  ;;  %s165_s12 = smov [#allocation2]   ;;  %s16_s11 = int_to_ptr.hbm [resolvable:$true] %s15_s11 }
   0x3   :  { %s17_s13 = sshll.u32 %s165_s12, 4  ;;  %s26_s16 = sshll.u32 %s195_s1, 4  ;;  %s18_s13 = int_to_ptr.vmem [resolvable:$true] %s17_s13  ;;  %s27_s16 = int_to_ptr.hbm [resolvable:$true] %s26_s16 }
   0x4   :  { %20 = dma.hbm_to_vmem [thread:$0]  %s16_s11, 128, %s18_s13, [#allocation3]  }
   0x5   :  { %s166_s17 = smov [#allocation5]  }
   0x6   :  { %s28_s18 = sshll.u32 %s166_s17, 4  ;;  %s29_s18 = int_to_ptr.vmem [resolvable:$true] %s28_s18 }
   0x7   :  { %31 = dma.hbm_to_vmem [thread:$0]  %s27_s16, 128, %s29_s18, [#allocation6]  }
   0x8   :  { %159 = dma.done.wait [#allocation3], 128  }
   0x9   :  { %160 = vsyncadd [#allocation3], 4294967168 }
   0xa   :  { %161 = dma.done.wait [#allocation6], 128  }
   0xb   :  { %162 = vsyncadd [#allocation6], 4294967168  ;;  %v40_v0 = vld [vmem:[#allocation2] sm:$0xff]  ;;  %v41_v1 = vld [vmem:[#allocation5] sm:$0xff]  ;;  %s167_s0 = smov [#allocation7]   ;;  %s71_s21 = sshll.u32 %s196_s2, 4  ;;  %s72_s21 = int_to_ptr.hbm [resolvable:$true] %s71_s21 }
   0xc   :  { %v42_v2 = vadd.f32 %v41_v1, %v40_v0  ;;  %v59_v7 = vmul.f32 2.0, %v40_v0  ;;  %s69_s1 = sshll.u32 %s167_s0, 4  ;;  %s70_s1 = int_to_ptr.vmem [resolvable:$true] %s69_s1 }
   0xe   :  { %vm43_vm0 = vcmp.gt.f32.partialorder %v42_v2, 0.0  ;;  %v60_v13 = vmul.f32 %v59_v7, %v41_v1 }
   0xf   :  { %v44_v3 = vsel %vm43_vm0, %v42_v2, 1.0 }
  0x10   :  { %85 = vrcp.f32 %v44_v3  ;;  %v56_v6 = vand.u32 2147483648, %v44_v3  ;;  %vm50_vm1 = vweird.f32 %v44_v3  ;;  %v54_v9 = vand.u32 2147483647, %v44_v3 }
  0x12   :  { %v57_v11 = vor.u32 1.1754944e-38, %v56_v6  ;;  %vm55_vm4 = vcmp.eq.f32.partialorder %v54_v9, 8.507059e+37 }
  0x16   :  { %v86_v4 = vpop.eup %85 }
  0x17   :  { %v46_v5 = vmul.f32 %v86_v4, %v44_v3  ;;  %vm51_vm2 = vweird.f32 %v86_v4 }
  0x18   :  { %vm52_vm3 = vmor %vm50_vm1, %vm51_vm2 }
  0x19   :  { %v47_v8 = vsub.f32 1.0, %v46_v5 }
  0x1b   :  { %v48_v10 = vmul.f32 %v86_v4, %v47_v8 }
  0x1d   :  { %v49_v12 = vadd.f32 %v86_v4, %v48_v10 }
  0x1f   :  { %v53_v14 = vsel %vm52_vm3, %v86_v4, %v49_v12 }
  0x20   :  { %v58_v15 = vsel %vm55_vm4, %v57_v11, %v53_v14 }
  0x21   :  { %v61_v16 = vmul.f32 %v60_v13, %v58_v15 }
  0x23   :  { %v62_v17 = vsel %vm43_vm0, %v61_v16, 0.0 }
  0x24   :  { %63 = vst [vmem:[#allocation7] sm:$0xff] %v62_v17 }
  0x25   :  { %74 = dma.vmem_to_hbm [thread:$0]  %s70_s1, 128, %s72_s21, [#allocation4]  }
  0x26   :  { %163 = dma.done.wait [#allocation4], 128  }
  0x27   :  { %164 = vsyncadd [#allocation4], 4294967168 }
  0x28   :  { %79 = vsyncpa [#allocation3], 1 }
  0x29   :  { %80 = vsyncpa [#allocation6], 1 }
  0x2a   :  { %81 = vsyncpa [#allocation4], 1 }

</bundles_post_ra>
